<compile_context>
chip_gen: v7x
topology: tpu7x:2x2x1
jax: 0.10.0
libtpu: 0.0.40
codegen_flags: <defaults>
</compile_context>

<pallas_src>
import jax
import jax.numpy as jnp
from jax.experimental import pallas as pl
from jax.experimental.pallas import tpu as pltpu

_LANES = 128
_SUBLANES = 8
_TARGET_BLOCK_BYTES = 4 << 20   # ~4 MiB per block per buffer
_VMEM_LIMIT_BYTES = 32 << 20    # safe scoped limit on v5e/v6e (128 MiB) and v7x (64 MiB)


def _round_up(a, b):
    return ((a + b - 1) // b) * b


def _copy_kernel(x_ref, o_ref):
    # Whole-tile, lane-dense copy; no compute (the reference forward is empty).
    o_ref[...] = x_ref[...]


def _lane_dense_copy(x2d, *, alias_in_to_out):
    """Copy a (rows, 128) slab HBM->VMEM->HBM with large, pipelined blocks."""
    rows = x2d.shape[0]
    itemsize = jnp.dtype(x2d.dtype).itemsize

    # ~4 MiB per block (per buffer), rounded down to a sublane multiple.
    max_block_rows = max(
        _SUBLANES,
        (_TARGET_BLOCK_BYTES // (_LANES * itemsize)) // _SUBLANES * _SUBLANES,
    )
    # Aim for >= 2 grid blocks so the "parallel" axis can shard across v7x's
    # two TensorCores; harmless single-block for tiny slabs.
    half_rows = _round_up(pl.cdiv(rows, 2), _SUBLANES)
    block_rows = min(rows, max(_SUBLANES, min(max_block_rows, half_rows)))
    grid = (pl.cdiv(rows, block_rows),)

    extra = {"input_output_aliases": {0: 0}} if alias_in_to_out else {}
    return pl.pallas_call(
        _copy_kernel,
        out_shape=jax.ShapeDtypeStruct((rows, _LANES), x2d.dtype),
        grid_spec=pl.GridSpec(
            grid=grid,
            in_specs=[pl.BlockSpec((block_rows, _LANES), lambda i: (i, 0))],
            out_specs=pl.BlockSpec((block_rows, _LANES), lambda i: (i, 0)),
        ),
        compiler_params=pltpu.CompilerParams(
            dimension_semantics=("parallel",),
            vmem_limit_bytes=_VMEM_LIMIT_BYTES,
        ),
        cost_estimate=pl.CostEstimate(
            flops=0,
            transcendentals=0,
            bytes_accessed=2 * rows * _LANES * itemsize,
        ),
        **extra,
    )(x2d)


@jax.jit
def _identity_on_device(x):
    orig_shape = x.shape
    n = x.size

    # Degenerate / empty input: nothing to copy, skip the kernel entirely.
    if n == 0:
        return x

    if n % _LANES == 0:
        # Aligned fast path: no pad, no tail slice, no alias (avoids the
        # defensive copy XLA would insert for an aliased non-donated param).
        # The reshapes are metadata-only bitcasts on a contiguous buffer.
        out2d = _lane_dense_copy(x.reshape(n // _LANES, _LANES),
                                 alias_in_to_out=False)
        return out2d.reshape(orig_shape)

    # Unaligned path: pad only to the next 128-lane multiple (not a full
    # 8x128 tile) and let the ragged sublane boundary be masked by Pallas.
    padded = _round_up(n, _LANES)
    flat = jnp.pad(x.reshape(-1), (0, padded - n))
    out2d = _lane_dense_copy(flat.reshape(padded // _LANES, _LANES),
                             alias_in_to_out=True)
    return out2d.reshape(-1)[:n].reshape(orig_shape)


def model_forward(idx, lbl=None, EMBEDDING_SIZE=256):
    """Pallas equivalent of Model.forward (a stub): identity on `idx`."""
    del lbl, EMBEDDING_SIZE  # unused by the (empty) reference forward
    return _identity_on_device(idx)


if __name__ == "__main__":
    key = jax.random.PRNGKey(0)
    k1, k2 = jax.random.split(key)

    # Unaligned path: 2 x 8 = 16 elements -> padded to one 128-lane row.
    idx_small = jax.random.randint(k1, (2, 8), 0, 256, dtype=jnp.int32)
    out_small = jax.block_until_ready(model_forward(idx_small))
    assert out_small.shape == idx_small.shape and out_small.dtype == idx_small.dtype
    assert bool(jnp.array_equal(out_small, idx_small))

    # Aligned fast path: 4 x 256 = 1024 elements -> (8, 128) slab, no pad/slice.
    idx_big = jax.random.randint(k2, (4, 256), 0, 256, dtype=jnp.int32)
    out_big = jax.block_until_ready(model_forward(idx_big))
    assert out_big.shape == idx_big.shape and out_big.dtype == idx_big.dtype
    assert bool(jnp.array_equal(out_big, idx_big))

    print("KERNEL_OK")
</pallas_src>

<mosaic_0001>
module attributes {stable_mosaic.version = 11 : i64} {
  func.func @_copy_kernel(%arg0: i32, %arg1: memref<1x128xi32, #tpu.memory_space<vmem>>, %arg2: memref<1x128xi32, #tpu.memory_space<vmem>>) attributes {dimension_semantics = [#tpu.dimension_semantics<parallel>], iteration_bounds = array<i64: 1>, scalar_prefetch = 0 : i64, scratch_operands = 0 : i64, tpu.core_type = #tpu.core_type<tc>, window_params = [{transform_indices = @transform_0, window_bounds = array<i64: 1, 128>}, {transform_indices = @transform_1, window_bounds = array<i64: 1, 128>}]} {
    %c0 = arith.constant 0 : index
    %c0_0 = arith.constant 0 : index
    %0 = vector.load %arg1[%c0, %c0_0] : memref<1x128xi32, #tpu.memory_space<vmem>>, vector<1x128xi32>
    %c0_1 = arith.constant 0 : index
    %c0_2 = arith.constant 0 : index
    %1 = vector.load %arg2[%c0_1, %c0_2] : memref<1x128xi32, #tpu.memory_space<vmem>>, vector<1x128xi32>
    tpu.vector_store %arg2[%c0_1, %c0_2], %0 {strides = array<i32>} : memref<1x128xi32, #tpu.memory_space<vmem>>, vector<1x128xi32>,
    return
  }
  func.func @transform_0(%arg0: i32) -> (i32, i32) {
    %c0_i32 = arith.constant 0 : i32
    %c0_i32_0 = arith.constant 0 : i32
    return %arg0, %c0_i32 : i32, i32
  }
  func.func @transform_1(%arg0: i32) -> (i32, i32) {
    %c0_i32 = arith.constant 0 : i32
    %c0_i32_0 = arith.constant 0 : i32
    return %arg0, %c0_i32 : i32, i32
  }
}

</mosaic_0001>

<bundles_post_ra>
// kernel: _identity_on_device.1
= control target key start
LH: loop header
LB: loop body
LE: loop exit
PB: predicated region body
PF: predicated region fallthrough
CT: control target
= control target key end

     0   :  { %s30_s0 = inlined_call_operand.vmem [shape: s32[1,128], index: 0, kind: input, shape index: {}, may-alias: {0,1}]   ;;  %s31_s1 = inlined_call_operand.vmem [shape: s32[1,128], index: 1, kind: output, shape index: {}, may-alias: {0,1}]  }
   0x1   :  { %v8_v0 = vld [vmem:[%s30_s0] sm:$0x1] }
   0x2   :  { %9 = vst [vmem:[%s31_s1] sm:$0x1] %v8_v0 }

</bundles_post_ra>
